<compile_context>
chip_gen: v5e
topology: v5e:2x2
jax: 0.10.0
libtpu: 0.0.40
codegen_flags: <defaults>
</compile_context>

<pallas_src>
import jax
import jax.numpy as jnp
from jax.experimental import pallas as pl
from jax.experimental.pallas import tpu as pltpu

_LANE = 128


def _round_up(n, m):
    return ((n + m - 1) // m) * m


def _pad_axis(x, axis, target):
    pad = target - x.shape[axis]
    if pad == 0:
        return x
    widths = [(0, 0)] * x.ndim
    widths[axis] = (0, pad)
    return jnp.pad(x, widths)


def attention_kernel(enc_ref, bias_ref, we_ref, wf_ref, maskb_ref,
                     ctx_ref, alpha_ref):
    f32 = jnp.float32
    TB, Pp, Ep = enc_ref.shape
    Ap = we_ref.shape[1]

    enc = enc_ref[...]                                    # (TB, Pp, Ep), matmul dtype
    enc2 = enc.reshape(TB * Pp, Ep)                       # leading-dim merge (layout-free)

    # att1 = encoder_att(encoder_out) (its bias is folded into bias_ref):
    # one big (TB*Pp, Ep) @ (Ep, Ap) MXU pass, f32 accumulation.
    att1 = jnp.dot(enc2, we_ref[...], preferred_element_type=f32)    # (TB*Pp, Ap)
    att1 = att1.reshape(TB, Pp, Ap)

    # pre = tanh(att1 + [be + decoder_att(h) + gate * converge_att(converge(c))])
    pre = jnp.tanh(att1 + bias_ref[...])                  # (TB, Pp, Ap) f32

    # full_att: contract the attention dim (flash-style batched einsum) ->
    # lane-dense (TB, 1, Pp) scores.  full_att bias + padded-lane -inf mask are
    # pre-folded into maskb (grid-invariant, VMEM resident).
    scores = jnp.einsum("bxa,bpa->bxp", wf_ref[...], pre,
                        preferred_element_type=f32)       # (TB, 1, Pp)
    scores = scores + maskb_ref[...]

    # softmax over the lane (P) axis; EUP reciprocal instead of a VPU divide.
    m = jnp.max(scores, axis=2, keepdims=True)
    e = jnp.exp(scores - m)
    denom = jnp.sum(e, axis=2, keepdims=True)
    alpha = e * pl.reciprocal(denom, approx=True)         # (TB, 1, Pp) f32

    # context = alpha @ encoder_out : batched MXU contraction, f32 accumulation.
    ctx = jnp.einsum("bxp,bpe->bxe", alpha.astype(enc.dtype), enc,
                     preferred_element_type=f32)          # (TB, 1, Ep)

    alpha_ref[...] = alpha
    ctx_ref[...] = ctx


def _choose_block_b(B, Pp, Ep, itemsize, enc_budget_bytes=8 * 1024 * 1024):
    """Batch-block size: double-buffered enc tile within budget, a few grid steps."""
    per_row = 2 * Pp * Ep * itemsize          # double-buffered bytes per batch row
    tb = max(1, min(B, enc_budget_bytes // max(per_row, 1)))
    # Keep >= 4 grid steps when B allows (pipelining; >= 2 steps/TC on v7x megacore).
    while tb > 1 and pl.cdiv(B, tb) < 4 and B >= 8:
        tb = max(1, tb // 2)
    return int(tb)


def attention_forward(encoder_out, decoder_hidden, converge_vector, params,
                      *, matmul_dtype=jnp.bfloat16, block_b=None):
    """encoder_out (B,P,E), decoder_hidden (B,D), converge_vector (B,P)
       -> (context (B,E), alpha (B,P))."""
    B, P, E = encoder_out.shape
    A = params["we"].shape[1]
    f32 = jnp.float32

    Pp = _round_up(P, _LANE)
    Ep = _round_up(E, _LANE)
    Ap = _round_up(A, _LANE)

    itemsize = jnp.dtype(matmul_dtype).itemsize
    TB = block_b if block_b is not None else _choose_block_b(B, Pp, Ep, itemsize)
    TB = max(1, min(TB, B))
    Bp = _round_up(B, TB)

    # ---- Wrapper-side (XLA) precompute: grid-invariant / M=1 work hoisted ----
    att2 = decoder_hidden @ params["wd"] + params["bd"]              # (B, A)
    cv = converge_vector @ params["wc"] + params["bc"]               # (B, Cv)
    att3 = cv @ params["wca"] + params["bca"]                        # (B, A)
    # Batch-global gate mirroring `if sum(sum(converge_vector)).item() != 0`.
    gate = (jnp.sum(converge_vector) != 0.0).astype(f32)
    bias = params["be"] + att2 + gate * att3                         # (B, A)
    bias_p = _pad_axis(bias.astype(f32), 1, Ap).reshape(B, 1, Ap)
    bias_p = _pad_axis(bias_p, 0, Bp)                                # (Bp, 1, Ap)

    # encoder_out: cast to matmul dtype in the wrapper (bf16 halves HBM traffic
    # and the double-buffered VMEM tile); zero-pad P/E lanes and the batch.
    enc_p = _pad_axis(_pad_axis(encoder_out, 2, Ep), 1, Pp)
    enc_p = _pad_axis(enc_p, 0, Bp).astype(matmul_dtype)             # (Bp, Pp, Ep)

    we_p = _pad_axis(_pad_axis(params["we"], 0, Ep), 1, Ap).astype(matmul_dtype)  # (Ep, Ap)

    # full_att weight as a broadcast (TB, 1, Ap) row; kept f32 (pre is f32).
    wf_row = _pad_axis(params["wf"].T, 1, Ap).astype(f32)            # (1, Ap)
    wf_b = jnp.broadcast_to(wf_row.reshape(1, 1, Ap), (TB, 1, Ap))

    # full_att bias + padded-lane -inf mask folded into one grid-invariant row.
    lane = jnp.arange(Pp)
    maskb = jnp.where(lane < P, params["bf"][0, 0], -1e30).astype(f32).reshape(1, 1, Pp)

    vmem = lambda: pl.BlockSpec(memory_space=pltpu.MemorySpace.VMEM)

    in_specs = [
        pl.BlockSpec((TB, Pp, Ep), lambda b: (b, 0, 0)),   # encoder_out tile
        pl.BlockSpec((TB, 1, Ap), lambda b: (b, 0, 0)),    # combined bias rows
        vmem(),                                            # we (resident)
        vmem(),                                            # wf broadcast rows (resident)
        vmem(),                                            # score bias / pad mask (resident)
    ]
    out_specs = (
        pl.BlockSpec((TB, 1, Ep), lambda b: (b, 0, 0)),
        pl.BlockSpec((TB, 1, Pp), lambda b: (b, 0, 0)),
    )
    out_shape = (
        jax.ShapeDtypeStruct((Bp, 1, Ep), f32),
        jax.ShapeDtypeStruct((Bp, 1, Pp), f32),
    )

    # Derived VMEM budget: double-buffered blocks + resident weights + f32 temps.
    block_bytes = TB * Pp * Ep * itemsize + TB * Ap * 4 + TB * (Ep + Pp) * 4
    temp_bytes = 2 * TB * Pp * Ap * 4 + TB * Pp * Ep * 4   # att1 / pre (+ widened enc)
    resident_bytes = Ep * Ap * itemsize + TB * Ap * 4 + Pp * 4
    est = 2 * block_bytes + temp_bytes + resident_bytes
    vmem_limit = int(min(48 * 1024 * 1024, max(32 * 1024 * 1024, 2 * est)))

    ctx_p, alpha_p = pl.pallas_call(
        attention_kernel,
        grid=(Bp // TB,),
        in_specs=in_specs,
        out_specs=out_specs,
        out_shape=out_shape,
        compiler_params=pltpu.CompilerParams(
            dimension_semantics=("parallel",),             # batch steps across TCs (v7x)
            vmem_limit_bytes=vmem_limit,                   # derived, < 64 MiB/TC on v7x
        ),
    )(enc_p, bias_p, we_p, wf_b, maskb)

    return ctx_p[:B, 0, :E], alpha_p[:B, 0, :P]


def init_params(key, encoder_dim, decoder_dim, converge_vector_channel,
                converge_vector_dim, attention_dim):
    """Deterministic synthetic init (uniform, like torch.nn.Linear default style)."""
    ks = jax.random.split(key, 10)

    def lin(kw, kb, fan_in, fan_out):
        bound = 1.0 / jnp.sqrt(fan_in)
        w = jax.random.uniform(kw, (fan_in, fan_out), jnp.float32, -bound, bound)
        b = jax.random.uniform(kb, (1, fan_out), jnp.float32, -bound, bound)
        return w, b

    we, be = lin(ks[0], ks[1], encoder_dim, attention_dim)
    wd, bd = lin(ks[2], ks[3], decoder_dim, attention_dim)
    wc, bc = lin(ks[4], ks[5], converge_vector_channel, converge_vector_dim)
    wca, bca = lin(ks[6], ks[7], converge_vector_dim, attention_dim)
    wf, bf = lin(ks[8], ks[9], attention_dim, 1)
    return dict(we=we, be=be, wd=wd, bd=bd, wc=wc, bc=bc,
                wca=wca, bca=bca, wf=wf, bf=bf)


def reference_forward(encoder_out, decoder_hidden, converge_vector, p):
    """Pure-JAX reference mirroring the PyTorch forward."""
    att1 = encoder_out @ p["we"] + p["be"]
    att2 = decoder_hidden @ p["wd"] + p["bd"]
    cv = converge_vector @ p["wc"] + p["bc"]
    att3 = cv @ p["wca"] + p["bca"]
    gate = (jnp.sum(converge_vector) != 0.0).astype(jnp.float32)
    pre = jnp.tanh(att1 + att2[:, None, :] + gate * att3[:, None, :])
    att = (pre @ p["wf"])[..., 0] + p["bf"][0, 0]
    alpha = jax.nn.softmax(att, axis=1)
    context = jnp.sum(encoder_out * alpha[:, :, None], axis=1)
    return context, alpha


if __name__ == "__main__":
    # Small shapes consistent with the module's conventions.
    B = 2                       # batch
    size = 4                    # encoder feature map side -> P = size^2
    P = size * size             # 16 positions (= converge_vector_channel)
    encoder_dim = 32
    decoder_dim = 32
    converge_vector_dim = 16
    attention_dim = 32

    key = jax.random.PRNGKey(0)
    kx, kh, kc, kp = jax.random.split(key, 4)

    encoder_out = jax.random.normal(kx, (B, P, encoder_dim), jnp.float32)
    decoder_hidden = jax.random.normal(kh, (B, decoder_dim), jnp.float32)
    converge_vector = jnp.abs(jax.random.normal(kc, (B, P), jnp.float32))  # nonzero -> converge branch

    params = init_params(kp, encoder_dim, decoder_dim, P,
                         converge_vector_dim, attention_dim)

    # f32 MXU-operand path, converge branch active: strict check vs reference.
    ctx, alpha = attention_forward(encoder_out, decoder_hidden, converge_vector,
                                   params, matmul_dtype=jnp.float32)
    jax.block_until_ready((ctx, alpha))
    rctx, ralpha = reference_forward(encoder_out, decoder_hidden, converge_vector, params)
    assert ctx.shape == (B, encoder_dim) and alpha.shape == (B, P)
    assert jnp.allclose(ctx, rctx, atol=5e-3, rtol=5e-3)
    assert jnp.allclose(alpha, ralpha, atol=5e-3, rtol=5e-3)

    # f32 path, converge branch inactive (all-zero converge vector).
    zero_cvg = jnp.zeros_like(converge_vector)
    ctx0, alpha0 = attention_forward(encoder_out, decoder_hidden, zero_cvg, params,
                                     matmul_dtype=jnp.float32)
    jax.block_until_ready((ctx0, alpha0))
    rctx0, ralpha0 = reference_forward(encoder_out, decoder_hidden, zero_cvg, params)
    assert jnp.allclose(ctx0, rctx0, atol=5e-3, rtol=5e-3)
    assert jnp.allclose(alpha0, ralpha0, atol=5e-3, rtol=5e-3)

    # Default path (bf16 MXU operands, f32 accumulation) - recommended on v6e/v7x.
    ctxb, alphab = attention_forward(encoder_out, decoder_hidden, converge_vector, params)
    jax.block_until_ready((ctxb, alphab))
    assert ctxb.shape == (B, encoder_dim) and alphab.shape == (B, P)
    assert bool(jnp.all(jnp.isfinite(ctxb))) and bool(jnp.all(jnp.isfinite(alphab)))
    assert jnp.allclose(jnp.sum(alphab, axis=1), 1.0, atol=1e-2)
    assert jnp.allclose(ctxb, rctx, atol=5e-2, rtol=5e-2)
    assert jnp.allclose(alphab, ralpha, atol=5e-2, rtol=5e-2)

    print("KERNEL_OK")
</pallas_src>

<mosaic_0001>
module attributes {stable_mosaic.version = 11 : i64} {
  func.func @attention_kernel(%arg0: i32, %arg1: memref<2x128x128xf32, #tpu.memory_space<vmem>>, %arg2: memref<2x1x128xf32, #tpu.memory_space<vmem>>, %arg3: memref<128x128xf32, #tpu.memory_space<vmem>>, %arg4: memref<2x1x128xf32, #tpu.memory_space<vmem>>, %arg5: memref<1x1x128xf32, #tpu.memory_space<vmem>>, %arg6: memref<2x1x128xf32, #tpu.memory_space<vmem>>, %arg7: memref<2x1x128xf32, #tpu.memory_space<vmem>>) attributes {dimension_semantics = [#tpu.dimension_semantics<parallel>], iteration_bounds = array<i64: 1>, scalar_prefetch = 0 : i64, scratch_operands = 0 : i64, tpu.core_type = #tpu.core_type<tc>, window_params = [{transform_indices = @transform_0, window_bounds = array<i64: 2, 128, 128>}, {transform_indices = @transform_1, window_bounds = array<i64: 2, 1, 128>}, {pipeline_mode = #tpu.pipeline_mode<synchronous>, transform_indices = @transform_2, window_bounds = array<i64: 128, 128>}, {pipeline_mode = #tpu.pipeline_mode<synchronous>, transform_indices = @transform_3, window_bounds = array<i64: 2, 1, 128>}, {pipeline_mode = #tpu.pipeline_mode<synchronous>, transform_indices = @transform_4, window_bounds = array<i64: 1, 1, 128>}, {transform_indices = @transform_5, window_bounds = array<i64: 2, 1, 128>}, {transform_indices = @transform_6, window_bounds = array<i64: 2, 1, 128>}]} {
    %c0 = arith.constant 0 : index
    %c0_0 = arith.constant 0 : index
    %c0_1 = arith.constant 0 : index
    %0 = vector.load %arg1[%c0, %c0_0, %c0_1] : memref<2x128x128xf32, #tpu.memory_space<vmem>>, vector<2x128x128xf32>
    %1 = vector.shape_cast %0 : vector<2x128x128xf32> to vector<256x128xf32>
    %c0_2 = arith.constant 0 : index
    %c0_3 = arith.constant 0 : index
    %2 = vector.load %arg3[%c0_2, %c0_3] : memref<128x128xf32, #tpu.memory_space<vmem>>, vector<128x128xf32>
    %cst = arith.constant dense<0.000000e+00> : vector<256x128xf32>
    %3 = tpu.matmul %1, %2, %cst {dimension_numbers = #tpu.dot_dimension_numbers<[1], [0], [0], [1], [0, 0, 1, 1], [], []>} : vector<256x128xf32>, vector<128x128xf32>, vector<256x128xf32> -> vector<256x128xf32>
    %4 = vector.shape_cast %3 : vector<256x128xf32> to vector<2x128x128xf32>
    %c0_4 = arith.constant 0 : index
    %c0_5 = arith.constant 0 : index
    %c0_6 = arith.constant 0 : index
    %5 = vector.load %arg2[%c0_4, %c0_5, %c0_6] : memref<2x1x128xf32, #tpu.memory_space<vmem>>, vector<2x1x128xf32>
    %6 = vector.broadcast %5 : vector<2x1x128xf32> to vector<2x128x128xf32>
    %7 = arith.addf %4, %6 : vector<2x128x128xf32>
    %8 = math.tanh %7 : vector<2x128x128xf32>
    %c0_7 = arith.constant 0 : index
    %c0_8 = arith.constant 0 : index
    %c0_9 = arith.constant 0 : index
    %9 = vector.load %arg4[%c0_7, %c0_8, %c0_9] : memref<2x1x128xf32, #tpu.memory_space<vmem>>, vector<2x1x128xf32>
    "tpu.trace_start"() <{level = 10 : i32, message = "bxa,bpa->bxp"}> : () -> ()
    %cst_10 = arith.constant dense<0.000000e+00> : vector<2x1x128xf32>
    %10 = tpu.matmul %9, %8, %cst_10 {dimension_numbers = #tpu.dot_dimension_numbers<[2], [2], [1], [1], [0, 0, 0, 1, 1, 1], [0], [0]>} : vector<2x1x128xf32>, vector<2x128x128xf32>, vector<2x1x128xf32> -> vector<2x1x128xf32>
    "tpu.trace_stop"() : () -> ()
    %c0_11 = arith.constant 0 : index
    %c0_12 = arith.constant 0 : index
    %c0_13 = arith.constant 0 : index
    %11 = vector.load %arg5[%c0_11, %c0_12, %c0_13] : memref<1x1x128xf32, #tpu.memory_space<vmem>>, vector<1x1x128xf32>
    %12 = vector.broadcast %11 : vector<1x1x128xf32> to vector<2x1x128xf32>
    %13 = arith.addf %10, %12 : vector<2x1x128xf32>
    %cst_14 = arith.constant dense<0xFF800000> : vector<2x1xf32>
    %14 = vector.multi_reduction <maximumf>, %13, %cst_14 [2] : vector<2x1x128xf32> to vector<2x1xf32>
    %15 = vector.shape_cast %14 : vector<2x1xf32> to vector<2x1x1xf32>
    %16 = vector.broadcast %15 : vector<2x1x1xf32> to vector<2x1x128xf32>
    %17 = arith.subf %13, %16 : vector<2x1x128xf32>
    %18 = math.exp %17 : vector<2x1x128xf32>
    %cst_15 = arith.constant dense<0.000000e+00> : vector<2x1xf32>
    %19 = vector.multi_reduction <add>, %18, %cst_15 [2] : vector<2x1x128xf32> to vector<2x1xf32>
    %20 = vector.shape_cast %19 : vector<2x1xf32> to vector<2x1x1xf32>
    %21 = tpu.reciprocal %20 {approx = true} : vector<2x1x1xf32> -> vector<2x1x1xf32>
    %22 = vector.broadcast %21 : vector<2x1x1xf32> to vector<2x1x128xf32>
    %23 = arith.mulf %18, %22 : vector<2x1x128xf32>
    "tpu.trace_start"() <{level = 10 : i32, message = "bxp,bpe->bxe"}> : () -> ()
    %cst_16 = arith.constant dense<0.000000e+00> : vector<2x1x128xf32>
    %24 = tpu.matmul %23, %0, %cst_16 {dimension_numbers = #tpu.dot_dimension_numbers<[2], [1], [1], [2], [0, 0, 0, 1, 1, 2], [0], [0]>} : vector<2x1x128xf32>, vector<2x128x128xf32>, vector<2x1x128xf32> -> vector<2x1x128xf32>
    "tpu.trace_stop"() : () -> ()
    %c0_17 = arith.constant 0 : index
    %c0_18 = arith.constant 0 : index
    %c0_19 = arith.constant 0 : index
    %25 = vector.load %arg7[%c0_17, %c0_18, %c0_19] : memref<2x1x128xf32, #tpu.memory_space<vmem>>, vector<2x1x128xf32>
    tpu.vector_store %arg7[%c0_17, %c0_18, %c0_19], %23 {strides = array<i32>} : memref<2x1x128xf32, #tpu.memory_space<vmem>>, vector<2x1x128xf32>,
    %c0_20 = arith.constant 0 : index
    %c0_21 = arith.constant 0 : index
    %c0_22 = arith.constant 0 : index
    %26 = vector.load %arg6[%c0_20, %c0_21, %c0_22] : memref<2x1x128xf32, #tpu.memory_space<vmem>>, vector<2x1x128xf32>
    tpu.vector_store %arg6[%c0_20, %c0_21, %c0_22], %24 {strides = array<i32>} : memref<2x1x128xf32, #tpu.memory_space<vmem>>, vector<2x1x128xf32>,
    return
  }
  func.func @transform_0(%arg0: i32) -> (i32, i32, i32) {
    %c0_i32 = arith.constant 0 : i32
    %c0_i32_0 = arith.constant 0 : i32
    %c0_i32_1 = arith.constant 0 : i32
    return %arg0, %c0_i32, %c0_i32_0 : i32, i32, i32
  }
  func.func @transform_1(%arg0: i32) -> (i32, i32, i32) {
    %c0_i32 = arith.constant 0 : i32
    %c0_i32_0 = arith.constant 0 : i32
    %c0_i32_1 = arith.constant 0 : i32
    return %arg0, %c0_i32, %c0_i32_0 : i32, i32, i32
  }
  func.func @transform_2(%arg0: i32) -> (i32, i32) {
    %c0_i32 = arith.constant 0 : i32
    %c0_i32_0 = arith.constant 0 : i32
    %c0_i32_1 = arith.constant 0 : i32
    return %c0_i32, %c0_i32_0 : i32, i32
  }
  func.func @transform_3(%arg0: i32) -> (i32, i32, i32) {
    %c0_i32 = arith.constant 0 : i32
    %c0_i32_0 = arith.constant 0 : i32
    %c0_i32_1 = arith.constant 0 : i32
    %c0_i32_2 = arith.constant 0 : i32
    return %c0_i32, %c0_i32_0, %c0_i32_1 : i32, i32, i32
  }
  func.func @transform_4(%arg0: i32) -> (i32, i32, i32) {
    %c0_i32 = arith.constant 0 : i32
    %c0_i32_0 = arith.constant 0 : i32
    %c0_i32_1 = arith.constant 0 : i32
    %c0_i32_2 = arith.constant 0 : i32
    return %c0_i32, %c0_i32_0, %c0_i32_1 : i32, i32, i32
  }
  func.func @transform_5(%arg0: i32) -> (i32, i32, i32) {
    %c0_i32 = arith.constant 0 : i32
    %c0_i32_0 = arith.constant 0 : i32
    %c0_i32_1 = arith.constant 0 : i32
    return %arg0, %c0_i32, %c0_i32_0 : i32, i32, i32
  }
  func.func @transform_6(%arg0: i32) -> (i32, i32, i32) {
    %c0_i32 = arith.constant 0 : i32
    %c0_i32_0 = arith.constant 0 : i32
    %c0_i32_1 = arith.constant 0 : i32
    return %arg0, %c0_i32, %c0_i32_0 : i32, i32, i32
  }
}

</mosaic_0001>

<bundles_post_ra>
// kernel: tpu_custom_call.1
= control target key start
LH: loop header
LB: loop body
LE: loop exit
PB: predicated region body
PF: predicated region fallthrough
CT: control target
= control target key end

     0   :  { %12 = vsyncpa [#allocation3], 0  ;;  %s885_s0 = inlined_call_operand.hbm [shape: f32[2,128,128], index: 0, kind: input, shape index: {}]   ;;  %s886_s1 = inlined_call_operand.hbm [shape: f32[2,1,128], index: 1, kind: input, shape index: {}]   ;;  %s887_s2 = inlined_call_operand.hbm [shape: f32[128,128], index: 2, kind: input, shape index: {}]   ;;  %s888_s3 = inlined_call_operand.vmem [shape: f32[2,1,128], index: 3, kind: input, shape index: {}]   ;;  %s889_s4 = inlined_call_operand.vmem [shape: f32[1,1,128], index: 4, kind: input, shape index: {}]   ;;  %s890_s5 = inlined_call_operand.hbm [shape: f32[2,1,128], index: 5, kind: output, shape index: {0}]   ;;  %s891_s6 = inlined_call_operand.hbm [shape: f32[2,1,128], index: 6, kind: output, shape index: {1}]  }
   0x1   :  { %13 = vsyncpa [#allocation6], 0 }
   0x2   :  { %14 = vsyncpa [#allocation4], 0  ;;  %s33_s23 = sshll.u32 %s886_s1, 4  ;;  %s34_s23 = int_to_ptr.hbm [resolvable:$true] %s33_s23 }
   0x3   :  { %15 = vsyncpa [#allocation10], 0  ;;  %s711_s24 = smov [#allocation5]   ;;  %s20_s28 = sshll.u32 %s885_s0, 4  ;;  %s21_s28 = int_to_ptr.hbm [resolvable:$true] %s20_s28 }
   0x4   :  { %s35_s25 = sshll.u32 %s711_s24, 4  ;;  %s712_s29 = smov 16   ;;  %s36_s25 = int_to_ptr.vmem [resolvable:$true] %s35_s25 }
   0x5   :  { %s713_s30 = smov 1   ;;  %s714_s7 = smov [#allocation2]  }
   0x6   :  { %41 = dma.hbm_to_vmem [thread:$0]  %s34_s23, 32, %s36_s25, [#allocation6], %s712_s29, %s712_s29, %s713_s30  }
   0x7   :  { %s22_s8 = sshll.u32 %s714_s7, 4  ;;  %s715_s1 = smov 128   ;;  %s23_s8 = int_to_ptr.vmem [resolvable:$true] %s22_s8 }
   0x8   :  { %s716_s9 = smov 8   ;;  %s46_s12 = sshll.u32 %s887_s2, 4  ;;  %s47_s12 = int_to_ptr.hbm [resolvable:$true] %s46_s12 }
   0x9   :  { %28 = dma.hbm_to_vmem [thread:$0]  %s21_s28, 4096, %s23_s8, [#allocation3], %s715_s1, %s715_s1, %s716_s9  }
   0xa   :  { %s717_s13 = smov [#allocation7]  }
   0xb   :  { %s48_s0 = sshll.u32 %s717_s13, 4  ;;  %s49_s0 = int_to_ptr.vmem [resolvable:$true] %s48_s0 }
   0xc   :  { %54 = dma.hbm_to_vmem [thread:$0]  %s47_s12, 2048, %s49_s0, [#allocation6], %s715_s1, %s715_s1, %s716_s9  }
   0xd   :  { %703 = dma.done.wait [#allocation3], 4096  }
   0xe   :  { %704 = vsyncadd [#allocation3], 4294963200 }
   0xf   :  { %705 = dma.done.wait [#allocation6], 2080  }
  0x10   :  { %706 = vsyncadd [#allocation6], 4294965216  ;;  %v118_v0 = vld [vmem:[#allocation7 + $0x78] sm:$0xff]  ;;  %v117_v1 = vld [vmem:[#allocation7 + $0x70] sm:$0xff]  ;;  %vm347_vm0 = vcmask 1040384   ;;  %s433_s21 = sshll.u32 %s891_s6, 4  ;;  %s434_s21 = int_to_ptr.hbm [resolvable:$true] %s433_s21 }
  0x11   :  { %119 = vmatpush.msra.mxu0 %v118_v0  ;;  %452 = vmatpush.msra.mxu1 %v118_v0  ;;  %v116_v2 = vld [vmem:[#allocation7 + $0x68] sm:$0xff]  ;;  %v115_v3 = vld [vmem:[#allocation7 + $0x60] sm:$0xff]  ;;  %v114_v4 = vld [vmem:[#allocation7 + $0x58] sm:$0xff]  ;;  %s719_s22 = smov [#allocation8]   ;;  %s420_s26 = sshll.u32 %s890_s5, 4  ;;  %s421_s26 = int_to_ptr.hbm [resolvable:$true] %s420_s26 }
  0x12   :  { %453 = vmatpush.msra.mxu2 %v118_v0  ;;  %454 = vmatpush.msra.mxu3 %v118_v0  ;;  %v113_v5 = vld [vmem:[#allocation7 + $0x50] sm:$0xff]  ;;  %v112_v6 = vld [vmem:[#allocation7 + $0x48] sm:$0xff]  ;;  %v111_v7 = vld [vmem:[#allocation7 + $0x40] sm:$0xff]  ;;  %s418_s23 = sshll.u32 %s719_s22, 4  ;;  %s419_s23 = int_to_ptr.vmem [resolvable:$true] %s418_s23 }
  0x13   :  { %120 = vmatpush.msra.mxu0 %v117_v1  ;;  %455 = vmatpush.msra.mxu1 %v117_v1  ;;  %v110_v8 = vld [vmem:[#allocation7 + $0x38] sm:$0xff]  ;;  %v109_v9 = vld [vmem:[#allocation7 + $0x30] sm:$0xff]  ;;  %v108_v10 = vld [vmem:[#allocation7 + $0x28] sm:$0xff] }
  0x14   :  { %456 = vmatpush.msra.mxu2 %v117_v1  ;;  %457 = vmatpush.msra.mxu3 %v117_v1  ;;  %v107_v11 = vld [vmem:[#allocation7 + $0x20] sm:$0xff]  ;;  %v106_v12 = vld [vmem:[#allocation7 + $0x18] sm:$0xff]  ;;  %v105_v13 = vld [vmem:[#allocation7 + $0x10] sm:$0xff] }
  0x15   :  { %121 = vmatpush.msra.mxu0 %v116_v2  ;;  %458 = vmatpush.msra.mxu1 %v116_v2  ;;  %v104_v14 = vld [vmem:[#allocation7 + $0x8] sm:$0xff]  ;;  %v103_v15 = vld [vmem:[#allocation7] sm:$0xff]  ;;  %v82_v17 = vld [vmem:[#allocation2 + $0x58] sm:$0xff] }
  0x16   :  { %459 = vmatpush.msra.mxu2 %v116_v2  ;;  %460 = vmatpush.msra.mxu3 %v116_v2  ;;  %v767_v16 = vld [vmem:[#allocation2] sm:$0xff]  ;;  %v86_v20 = vld [vmem:[#allocation2 + $0x78] sm:$0xff]  ;;  %v85_v21 = vld [vmem:[#allocation2 + $0x70] sm:$0xff] }
  0x17   :  { %122 = vmatpush.msra.mxu0 %v115_v3  ;;  %461 = vmatpush.msra.mxu1 %v115_v3  ;;  %v769_v18 = vld [vmem:[#allocation2 + $0xa0] sm:$0xff]  ;;  %v72_v22 = vld [vmem:[#allocation2 + $0x8] sm:$0xff]  ;;  %v73_v27 = vld [vmem:[#allocation2 + $0x10] sm:$0xff] }
  0x18   :  { %462 = vmatpush.msra.mxu2 %v115_v3  ;;  %463 = vmatpush.msra.mxu3 %v115_v3  ;;  %v771_v19 = vld [vmem:[#allocation2 + $0xe0] sm:$0xff]  ;;  %v84_v24 = vld [vmem:[#allocation2 + $0x68] sm:$0xff]  ;;  %v782_v28 = vld [vmem:[#allocation2 + $0xb0] sm:$0xff] }
  0x19   :  { %123 = vmatpush.msra.mxu0 %v114_v4  ;;  %464 = vmatpush.msra.mxu1 %v114_v4  ;;  %v83_v23 = vld [vmem:[#allocation2 + $0x60] sm:$0xff]  ;;  %v776_v25 = vld [vmem:[#allocation2 + $0xa8] sm:$0xff]  ;;  %v101_v29 = vld [vmem:[#allocation2 + $0xf0] sm:$0xff] }
  0x1a   :  { %465 = vmatpush.msra.mxu2 %v114_v4  ;;  %466 = vmatpush.msra.mxu3 %v114_v4  ;;  %v778_v26 = vld [vmem:[#allocation2 + $0xe8] sm:$0xff]  ;;  %v74_v30 = vld [vmem:[#allocation2 + $0x18] sm:$0xff]  ;;  %v75_v33 = vld [vmem:[#allocation2 + $0x20] sm:$0xff] }
  0x1b   :  { %124 = vmatpush.msra.mxu0 %v113_v5  ;;  %467 = vmatpush.msra.mxu1 %v113_v5  ;;  %v94_v31 = vld [vmem:[#allocation2 + $0xb8] sm:$0xff]  ;;  %v95_v34 = vld [vmem:[#allocation2 + $0xc0] sm:$0xff]  ;;  %v76_v35 = vld [vmem:[#allocation2 + $0x28] sm:$0xff] }
  0x1c   :  { %468 = vmatpush.msra.mxu2 %v113_v5  ;;  %469 = vmatpush.msra.mxu3 %v113_v5  ;;  %v102_v32 = vld [vmem:[#allocation2 + $0xf8] sm:$0xff]  ;;  %v87_v36 = vld [vmem:[#allocation2 + $0x80] sm:$0xff]  ;;  %v96_v37 = vld [vmem:[#allocation2 + $0xc8] sm:$0xff] }
  0x1d   :  { %125 = vmatpush.msra.mxu0 %v112_v6  ;;  %470 = vmatpush.msra.mxu1 %v112_v6  ;;  %v81_v38 = vld [vmem:[#allocation2 + $0x50] sm:$0xff]  ;;  %v80_v39 = vld [vmem:[#allocation2 + $0x48] sm:$0xff]  ;;  %v79_v40 = vld [vmem:[#allocation2 + $0x40] sm:$0xff] }
  0x1e   :  { %471 = vmatpush.msra.mxu2 %v112_v6  ;;  %472 = vmatpush.msra.mxu3 %v112_v6  ;;  %v77_v41 = vld [vmem:[#allocation2 + $0x30] sm:$0xff]  ;;  %v88_v42 = vld [vmem:[#allocation2 + $0x88] sm:$0xff]  ;;  %v78_v44 = vld [vmem:[#allocation2 + $0x38] sm:$0xff] }
  0x1f   :  { %126 = vmatpush.msra.mxu0 %v111_v7  ;;  %473 = vmatpush.msra.mxu1 %v111_v7  ;;  %v97_v43 = vld [vmem:[#allocation2 + $0xd0] sm:$0xff]  ;;  %v98_v46 = vld [vmem:[#allocation2 + $0xd8] sm:$0xff]  ;;  %v805_v62 = vld [vmem:[#allocation5 + $0x1] ss:$0 sm:$0xff] }
  0x20   :  { %474 = vmatpush.msra.mxu2 %v111_v7  ;;  %475 = vmatpush.msra.mxu3 %v111_v7  ;;  %v89_v45 = vld [vmem:[#allocation2 + $0x90] sm:$0xff]  ;;  %v90_v47 = vld [vmem:[#allocation2 + $0x98] sm:$0xff]  ;;  %v807_v63 = vld [vmem:[#allocation5] ss:$0 sm:$0xff] }
  0x21   :  { %127 = vmatpush.msra.mxu0 %v110_v8  ;;  %476 = vmatpush.msra.mxu1 %v110_v8 }
  0x22   :  { %477 = vmatpush.msra.mxu2 %v110_v8  ;;  %478 = vmatpush.msra.mxu3 %v110_v8 }
  0x23   :  { %128 = vmatpush.msra.mxu0 %v109_v9  ;;  %479 = vmatpush.msra.mxu1 %v109_v9 }
  0x24   :  { %480 = vmatpush.msra.mxu2 %v109_v9  ;;  %481 = vmatpush.msra.mxu3 %v109_v9 }
  0x25   :  { %129 = vmatpush.msra.mxu0 %v108_v10  ;;  %482 = vmatpush.msra.mxu1 %v108_v10 }
  0x26   :  { %483 = vmatpush.msra.mxu2 %v108_v10  ;;  %484 = vmatpush.msra.mxu3 %v108_v10 }
  0x27   :  { %130 = vmatpush.msra.mxu0 %v107_v11  ;;  %485 = vmatpush.msra.mxu1 %v107_v11 }
  0x28   :  { %486 = vmatpush.msra.mxu2 %v107_v11  ;;  %487 = vmatpush.msra.mxu3 %v107_v11 }
  0x29   :  { %131 = vmatpush.msra.mxu0 %v106_v12  ;;  %488 = vmatpush.msra.mxu1 %v106_v12 }
  0x2a   :  { %489 = vmatpush.msra.mxu2 %v106_v12  ;;  %490 = vmatpush.msra.mxu3 %v106_v12 }
  0x2b   :  { %132 = vmatpush.msra.mxu0 %v105_v13  ;;  %491 = vmatpush.msra.mxu1 %v105_v13 }
  0x2c   :  { %492 = vmatpush.msra.mxu2 %v105_v13  ;;  %493 = vmatpush.msra.mxu3 %v105_v13 }
  0x2d   :  { %133 = vmatpush.msra.mxu0 %v104_v14  ;;  %494 = vmatpush.msra.mxu1 %v104_v14 }
  0x2e   :  { %495 = vmatpush.msra.mxu2 %v104_v14  ;;  %496 = vmatpush.msra.mxu3 %v104_v14 }
  0x2f   :  { %134 = vmatpush.msra.mxu0 %v103_v15  ;;  %497 = vmatpush.msra.mxu1 %v103_v15 }
  0x30   :  { %498 = vmatpush.msra.mxu2 %v103_v15  ;;  %499 = vmatpush.msra.mxu3 %v103_v15 }
  0x31   :  { %135 = vmatmul.f32.vlgmr.msra.gmra.mxu0 %v767_v16  ;;  %168 = vmatmul.f32.vlgmr.msra.gmra.mxu1 %v82_v17 }
  0x32   :  { %195 = vmatmul.f32.vlgmr.msra.gmra.mxu2 %v769_v18  ;;  %219 = vmatmul.f32.vlgmr.msra.gmra.mxu3 %v771_v19 }
  0x33   :  { %370 = vmatpush.msrb.mxu3 %v86_v20 }
  0x35   :  { %371 = vmatpush.msrb.mxu3 %v85_v21 }
  0x37   :  { %372 = vmatpush.msrb.mxu3 %v84_v24 }
  0x39   :  { %138 = vmatmul.f32.gmra.mxu0 %v72_v22  ;;  %171 = vmatmul.f32.gmra.mxu1 %v83_v23 }
  0x3a   :  { %198 = vmatmul.f32.gmra.mxu2 %v776_v25  ;;  %222 = vmatmul.f32.gmra.mxu3 %v778_v26 }
  0x3b   :  { %373 = vmatpush.msrb.mxu3 %v83_v23 }
  0x3d   :  { %374 = vmatpush.msrb.mxu3 %v82_v17 }
  0x3f   :  { %375 = vmatpush.msrb.mxu3 %v81_v38 }
  0x41   :  { %141 = vmatmul.f32.gmra.mxu0 %v73_v27  ;;  %174 = vmatmul.f32.gmra.mxu1 %v84_v24 }
  0x42   :  { %201 = vmatmul.f32.gmra.mxu2 %v782_v28  ;;  %225 = vmatmul.f32.gmra.mxu3 %v101_v29 }
  0x43   :  { %376 = vmatpush.msrb.mxu3 %v80_v39 }
  0x45   :  { %377 = vmatpush.msrb.mxu3 %v79_v40 }
  0x47   :  { %378 = vmatpush.msrb.mxu3 %v78_v44 }
  0x49   :  { %144 = vmatmul.f32.gmra.mxu0 %v74_v30  ;;  %177 = vmatmul.f32.gmra.mxu1 %v85_v21 }
  0x4a   :  { %204 = vmatmul.f32.gmra.mxu2 %v94_v31  ;;  %228 = vmatmul.f32.gmra.mxu3 %v102_v32 }
  0x4b   :  { %379 = vmatpush.msrb.mxu3 %v77_v41 }
  0x4d   :  { %380 = vmatpush.msrb.mxu3 %v76_v35 }
  0x4f   :  { %381 = vmatpush.msrb.mxu3 %v75_v33 }
  0x51   :  { %147 = vmatmul.f32.gmra.mxu0 %v75_v33  ;;  %180 = vmatmul.f32.gmra.mxu1 %v86_v20 }
  0x52   :  { %207 = vmatmul.f32.gmra.mxu2 %v95_v34  ;;  %382 = vmatpush.msrb.mxu3 %v74_v30 }
  0x54   :  { %383 = vmatpush.msrb.mxu3 %v73_v27 }
  0x56   :  { %384 = vmatpush.msrb.mxu3 %v72_v22 }
  0x58   :  { %385 = vmatpush.msrb.mxu3 %v767_v16 }
  0x59   :  { %150 = vmatmul.f32.gmra.mxu0 %v76_v35  ;;  %183 = vmatmul.f32.gmra.mxu1 %v87_v36 }
  0x5a   :  { %210 = vmatmul.f32.gmra.mxu2 %v96_v37  ;;  %390 = vmatpush.msra.mxu3 %v102_v32 }
  0x5c   :  { %391 = vmatpush.msra.mxu3 %v101_v29 }
  0x5e   :  { %392 = vmatpush.msra.mxu3 %v778_v26 }
  0x60   :  { %393 = vmatpush.msra.mxu3 %v771_v19 }
  0x61   :  { %153 = vmatmul.f32.gmra.mxu0 %v77_v41  ;;  %186 = vmatmul.f32.gmra.mxu1 %v88_v42 }
  0x62   :  { %213 = vmatmul.f32.gmra.mxu2 %v97_v43  ;;  %394 = vmatpush.msra.mxu3 %v98_v46 }
  0x64   :  { %395 = vmatpush.msra.mxu3 %v97_v43 }
  0x66   :  { %396 = vmatpush.msra.mxu3 %v96_v37 }
  0x68   :  { %397 = vmatpush.msra.mxu3 %v95_v34 }
  0x69   :  { %156 = vmatmul.f32.gmra.mxu0 %v78_v44  ;;  %189 = vmatmul.f32.gmra.mxu1 %v89_v45 }
  0x6a   :  { %216 = vmatmul.f32.gmra.mxu2 %v98_v46  ;;  %398 = vmatpush.msra.mxu3 %v94_v31 }
  0x6c   :  { %399 = vmatpush.msra.mxu3 %v782_v28 }
  0x6e   :  { %400 = vmatpush.msra.mxu3 %v776_v25 }
  0x70   :  { %401 = vmatpush.msra.mxu3 %v769_v18 }
  0x71   :  { %159 = vmatmul.f32.gmra.mxu0 %v79_v40  ;;  %192 = vmatmul.f32.gmra.mxu1 %v90_v47 }
  0x72   :  { %402 = vmatpush.msra.mxu3 %v90_v47 }
  0x74   :  { %403 = vmatpush.msra.mxu3 %v89_v45 }
  0x76   :  { %404 = vmatpush.msra.mxu3 %v88_v42 }
  0x78   :  { %405 = vmatpush.msra.mxu3 %v87_v36 }
  0x79   :  { %162 = vmatmul.f32.gmra.mxu0 %v80_v39 }
  0x81   :  { %165 = vmatmul.f32.gmra.mxu0 %v81_v38 }
  0xae   :  { %v791_v48 = vpop.f32.mrf.mxu0  ;;  %v169_v49 = vpop.f32.mrf.mxu1 }
  0xaf   :  { %v251_v22 = vadd.f32 %v807_v63, %v169_v49 }
  0xb5   :  { %v793_v50 = vpop.f32.mrf.mxu2  ;;  %v220_v51 = vpop.f32.mrf.mxu3 }
  0xb6   :  { %v795_v52 = vpop.f32.mrf.mxu0  ;;  %v172_v53 = vpop.f32.mrf.mxu1  ;;  %v268_v15 = vadd.f32 %v805_v62, %v220_v51 }
  0xb7   :  { %v252_v17 = vadd.f32 %v807_v63, %v172_v53 }
  0xbd   :  { %v797_v54 = vpop.f32.mrf.mxu2  ;;  %v223_v55 = vpop.f32.mrf.mxu3 }
  0xbe   :  { %v799_v56 = vpop.f32.mrf.mxu0  ;;  %v175_v57 = vpop.f32.mrf.mxu1  ;;  %v269_v8 = vadd.f32 %v805_v62, %v223_v55  ;;  %v261_v47 = vadd.f32 %v805_v62, %v797_v54 }
  0xbf   :  { %v253_v9 = vadd.f32 %v807_v63, %v175_v57  ;;  %v260_v57 = vadd.f32 %v805_v62, %v793_v50 }
  0xc5   :  { %v801_v58 = vpop.f32.mrf.mxu2  ;;  %v226_v59 = vpop.f32.mrf.mxu3 }
  0xc6   :  { %v803_v60 = vpop.f32.mrf.mxu0  ;;  %v178_v61 = vpop.f32.mrf.mxu1  ;;  %v270_v2 = vadd.f32 %v805_v62, %v226_v59  ;;  %v262_v44 = vadd.f32 %v805_v62, %v801_v58 }
  0xc7   :  { %v254_v7 = vadd.f32 %v807_v63, %v178_v61 }
  0xcd   :  { %v205_v0 = vpop.f32.mrf.mxu2  ;;  %v229_v1 = vpop.f32.mrf.mxu3 }
  0xce   :  { %v271_v3 = vadd.f32 %v805_v62, %v229_v1  ;;  %v811_v4 = vpop.f32.mrf.mxu0  ;;  %v181_v5 = vpop.f32.mrf.mxu1  ;;  %v263_v39 = vadd.f32 %v805_v62, %v205_v0 }
  0xcf   :  { %v255_v6 = vadd.f32 %v807_v63, %v181_v5 }
  0xd0   :  { %511 = vtanh.f32 %v271_v3 }
  0xd1   :  { %513 = vtanh.f32 %v270_v2 }
  0xd2   :  { %515 = vtanh.f32 %v255_v6 }
  0xd3   :  { %517 = vtanh.f32 %v254_v7 }
  0xd4   :  { %519 = vtanh.f32 %v269_v8 }
  0xd5   :  { %v208_v10 = vpop.f32.mrf.mxu2  ;;  %521 = vtanh.f32 %v253_v9  ;;  %v244_v9 = vadd.f32 %v807_v63, %v811_v4  ;;  %v242_v4 = vadd.f32 %v807_v63, %v799_v56  ;;  %v240_v56 = vadd.f32 %v807_v63, %v791_v48 }
  0xd6   :  { %v817_v11 = vpop.f32.mrf.mxu0  ;;  %v512_v12 = vpop.eup %511  ;;  %523 = vtanh.f32 %v268_v15  ;;  %v264_v38 = vadd.f32 %v805_v62, %v208_v10 }
  0xd7   :  { %v514_v13 = vpop.eup %513  ;;  %327 = vmatpush.xpose.msrb.mxu2 %v512_v12  ;;  %525 = vtanh.f32 %v252_v17  ;;  %v824_v28 = vpop.f32.mrf.mxu1  ;;  %v245_v3 = vadd.f32 %v807_v63, %v817_v11  ;;  %v243_v11 = vadd.f32 %v807_v63, %v803_v60  ;;  %v305_v60 = vld [vmem:[%s888_s3 + $0x1] sm:$0x1] }
  0xd8   :  { %v516_v14 = vpop.eup %515  ;;  %527 = vtanh.f32 %v251_v22  ;;  %v306_v22 = vld [vmem:[%s889_s4] sm:$0x1] }
  0xd9   :  { %307 = vmatpush.xpose.msrb.mxu1 %v516_v14  ;;  %v518_v16 = vpop.eup %517 }
  0xda   :  { %v520_v18 = vpop.eup %519 }
  0xdb   :  { %328 = vmatpush.xpose.msrb.mxu2 %v514_v13  ;;  %v522_v21 = vpop.eup %521  ;;  %v256_v13 = vadd.f32 %v805_v62, %v824_v28 }
  0xdc   :  { %v524_v23 = vpop.eup %523 }
  0xdd   :  { %v211_v19 = vpop.f32.mrf.mxu2  ;;  %308 = vmatpush.xpose.msrb.mxu1 %v518_v16  ;;  %v526_v24 = vpop.eup %525 }
  0xde   :  { %v821_v20 = vpop.f32.mrf.mxu0  ;;  %v528_v27 = vpop.eup %527  ;;  %v265_v34 = vadd.f32 %v805_v62, %v211_v19 }
  0xdf   :  { %329 = vmatpush.xpose.msrb.mxu2 %v520_v18  ;;  %v187_v33 = vpop.f32.mrf.mxu1  ;;  %v246_v0 = vadd.f32 %v807_v63, %v821_v20 }
  0xe0   :  { %v257_v8 = vadd.f32 %v805_v62, %v187_v33 }
  0xe1   :  { %309 = vmatpush.xpose.msrb.mxu1 %v522_v21  ;;  %v304_v21 = vld [vmem:[%s888_s3] sm:$0x1]  ;;  %s718_s3 = smov [#allocation9]  }
  0xe2   :  { %s431_s4 = sshll.u32 %s718_s3, 4  ;;  %s432_s4 = int_to_ptr.vmem [resolvable:$true] %s431_s4 }
  0xe3   :  { %330 = vmatpush.xpose.msrb.mxu2 %v524_v23 }
  0xe5   :  { %v214_v25 = vpop.f32.mrf.mxu2  ;;  %310 = vmatpush.xpose.msrb.mxu1 %v526_v24 }
  0xe6   :  { %v157_v26 = vpop.f32.mrf.mxu0  ;;  %v266_v30 = vadd.f32 %v805_v62, %v214_v25 }
  0xe7   :  { %v190_v40 = vpop.f32.mrf.mxu1  ;;  %v247_v58 = vadd.f32 %v807_v63, %v157_v26 }
  0xe8   :  { %v258_v2 = vadd.f32 %v805_v62, %v190_v40 }
  0xe9   :  { %311 = vmatpush.xpose.msrb.mxu1 %v528_v27 }
  0xed   :  { %v217_v29 = vpop.f32.mrf.mxu2 }
  0xee   :  { %v267_v31 = vadd.f32 %v805_v62, %v217_v29  ;;  %v160_v32 = vpop.f32.mrf.mxu0 }
  0xef   :  { %v248_v49 = vadd.f32 %v807_v63, %v160_v32  ;;  %v193_v55 = vpop.f32.mrf.mxu1 }
  0xf0   :  { %529 = vtanh.f32 %v267_v31  ;;  %v259_v61 = vadd.f32 %v805_v62, %v193_v55  ;;  %v241_v62 = vadd.f32 %v807_v63, %v795_v52 }
  0xf1   :  { %531 = vtanh.f32 %v266_v30 }
  0xf2   :  { %533 = vtanh.f32 %v265_v34 }
  0xf3   :  { %535 = vtanh.f32 %v264_v38 }
  0xf4   :  { %537 = vtanh.f32 %v263_v39 }
  0xf6   :  { %v530_v35 = vpop.eup %529  ;;  %v163_v36 = vpop.f32.mrf.mxu0 }
  0xf7   :  { %331 = vmatpush.xpose.msrb.mxu2 %v530_v35  ;;  %v532_v37 = vpop.eup %531  ;;  %v249_v45 = vadd.f32 %v807_v63, %v163_v36 }
  0xf8   :  { %v534_v41 = vpop.eup %533 }
  0xf9   :  { %v536_v46 = vpop.eup %535 }
  0xfa   :  { %v538_v51 = vpop.eup %537 }
  0xfb   :  { %332 = vmatpush.xpose.msrb.mxu2 %v532_v37 }
  0xfe   :  { %v166_v42 = vpop.f32.mrf.mxu0 }
  0xff   :  { %v250_v43 = vadd.f32 %v807_v63, %v166_v42  ;;  %333 = vmatpush.xpose.msrb.mxu2 %v534_v41 }
 0x101   :  { %539 = vtanh.f32 %v250_v43 }
 0x102   :  { %541 = vtanh.f32 %v262_v44 }
 0x103   :  { %334 = vmatpush.xpose.msrb.mxu2 %v536_v46  ;;  %543 = vtanh.f32 %v249_v45 }
 0x104   :  { %545 = vtanh.f32 %v261_v47 }
 0x105   :  { %547 = vtanh.f32 %v248_v49 }
 0x106   :  { %549 = vtanh.f32 %v260_v57 }
 0x107   :  { %v540_v53 = vpop.eup %539  ;;  %335 = vmatpush.xpose.msrb.mxu2 %v538_v51  ;;  %551 = vtanh.f32 %v247_v58 }
 0x108   :  { %312 = vmatpush.xpose.msrb.mxu1 %v540_v53  ;;  %v542_v59 = vpop.eup %541  ;;  %553 = vtanh.f32 %v259_v61 }
 0x109   :  { %v544_v54 = vpop.eup %543  ;;  %555 = vtanh.f32 %v246_v0 }
 0x10a   :  { %v546_v1 = vpop.eup %545  ;;  %557 = vtanh.f32 %v258_v2 }
 0x10b   :  { %336 = vmatpush.xpose.msrb.mxu2 %v542_v59  ;;  %v548_v50 = vpop.eup %547  ;;  %559 = vtanh.f32 %v245_v3 }
 0x10c   :  { %313 = vmatpush.xpose.msrb.mxu1 %v544_v54  ;;  %v550_v5 = vpop.eup %549  ;;  %561 = vtanh.f32 %v257_v8 }
 0x10d   :  { %v552_v6 = vpop.eup %551  ;;  %563 = vtanh.f32 %v244_v9 }
 0x10e   :  { %v554_v7 = vpop.eup %553  ;;  %565 = vtanh.f32 %v256_v13 }
 0x10f   :  { %337 = vmatpush.xpose.msrb.mxu2 %v546_v1  ;;  %v556_v10 = vpop.eup %555  ;;  %567 = vtanh.f32 %v243_v11 }
 0x110   :  { %314 = vmatpush.xpose.msrb.mxu1 %v548_v50  ;;  %v558_v12 = vpop.eup %557  ;;  %569 = vtanh.f32 %v242_v4 }
 0x111   :  { %v560_v14 = vpop.eup %559  ;;  %571 = vtanh.f32 %v241_v62 }
 0x112   :  { %v562_v15 = vpop.eup %561  ;;  %573 = vtanh.f32 %v240_v56 }
 0x113   :  { %338 = vmatpush.xpose.msrb.mxu2 %v550_v5  ;;  %v564_v16 = vpop.eup %563 }
 0x114   :  { %315 = vmatpush.xpose.msrb.mxu1 %v552_v6  ;;  %v566_v17 = vpop.eup %565 }
 0x115   :  { %v568_v18 = vpop.eup %567 }
 0x116   :  { %v570_v19 = vpop.eup %569 }
 0x117   :  { %339 = vmatpush.xpose.msrb.mxu2 %v554_v7  ;;  %v572_v20 = vpop.eup %571 }
 0x118   :  { %316 = vmatpush.xpose.msrb.mxu1 %v556_v10  ;;  %v574_v52 = vpop.eup %573 }
 0x11b   :  { %340 = vmatpush.xpose.msrb.mxu2 %v558_v12 }
 0x11c   :  { %317 = vmatpush.xpose.msrb.mxu1 %v560_v14 }
 0x11f   :  { %341 = vmatpush.xpose.msrb.mxu2 %v562_v15 }
 0x120   :  { %318 = vmatpush.xpose.msrb.mxu1 %v564_v16 }
 0x123   :  { %342 = vmatpush.xpose.msrb.mxu2 %v566_v17 }
 0x124   :  { %319 = vmatpush.xpose.msrb.mxu1 %v568_v18 }
 0x126   :  { %343 = vmatmul.f32.vlgmr.msrb.gmra.mxu2 %v305_v60 }
 0x128   :  { %320 = vmatpush.xpose.msrb.mxu1 %v570_v19 }
 0x12c   :  { %321 = vmatpush.xpose.msrb.mxu1 %v572_v20 }
 0x130   :  { %322 = vmatpush.xpose.msrb.mxu1 %v574_v52 }
 0x133   :  { %323 = vmatmul.f32.vlgmr.msrb.gmra.mxu1 %v304_v21 }
 0x1a9   :  { %v344_v63 = vpop.f32.mrf.mxu2 }
 0x1aa   :  { %v345_v25 = vadd.f32 %v344_v63, %v306_v22 }
 0x1ac   :  { %v351_v26 = vsel %vm347_vm0, %v345_v25, -inf }
 0x1b0   :  { %v324_v23 = vpop.f32.mrf.mxu1 }
 0x1b1   :  { %v325_v48 = vadd.f32 %v324_v23, %v306_v22 }
 0x1b3   :  { %v348_v24 = vsel %vm347_vm0, %v325_v48, -inf }
 0x1b4   :  { %349 = vmax.xlane.f32.xlu0 %v348_v24 }
 0x1bc   :  { %352 = vmax.xlane.f32.xlu0 %v351_v26 }
 0x227   :  { %v350_v27 = vpop.xlane.xlu0 %349 }
 0x228   :  { %v354_v28 = vsub.f32 %v325_v48, %v350_v27 }
 0x22a   :  { %v356_v29 = vmul.f32 1.442695, %v354_v28 }
 0x22c   :  { %575 = vpow2.f32 %v356_v29 }
 0x22f   :  { %v353_v30 = vpop.xlane.xlu0 %352 }
 0x230   :  { %v355_v31 = vsub.f32 %v345_v25, %v353_v30 }
 0x232   :  { %v576_v32 = vpop.eup %575  ;;  %v358_v33 = vmul.f32 1.442695, %v355_v31 }
 0x233   :  { %v360_v34 = vsel %vm347_vm0, %v576_v32, 0.0 }
 0x234   :  { %577 = vpow2.f32 %v358_v33  ;;  %361 = vadd.xlane.f32.xlu1 %v360_v34 }
 0x23a   :  { %v578_v35 = vpop.eup %577 }
 0x23b   :  { %v363_v36 = vsel %vm347_vm0, %v578_v35, 0.0 }
 0x23c   :  { %364 = vadd.xlane.f32.xlu1 %v363_v36 }
 0x2a7   :  { %v362_v37 = vpop.xlane.xlu1 %361 }
 0x2a8   :  { %579 = vrcp.f32 %v362_v37 }
 0x2ae   :  { %v580_v38 = vpop.eup %579 }
 0x2af   :  { %v365_v39 = vpop.xlane.xlu1 %364  ;;  %v368_v40 = vmul.f32 %v580_v38, %v576_v32 }
 0x2b0   :  { %581 = vrcp.f32 %v365_v39 }
 0x2b1   :  { %386 = vmatmul.f32.vlgmr.msrb.gmra.mxu3 %v368_v40  ;;  %410 = vst [vmem:[#allocation9] sm:$0x1] %v368_v40 }
 0x2b6   :  { %v582_v41 = vpop.eup %581 }
 0x2b7   :  { %v369_v42 = vmul.f32 %v582_v41, %v578_v35 }
 0x2b9   :  { %411 = vst [vmem:[#allocation9 + $0x1] sm:$0x1] %v369_v42  ;;  %406 = vmatmul.f32.vlgmr.msra.gmra.mxu3 %v369_v42 }
 0x2ba   :  { %439 = dma.vmem_to_hbm [thread:$0]  %s432_s4, 32, %s434_s21, [#allocation10], %s712_s29, %s712_s29, %s713_s30  }
 0x334   :  { %v387_v43 = vpop.f32.mrf.mxu3 }
 0x335   :  { %412 = vst [vmem:[#allocation8] sm:$0x1] %v387_v43 }
 0x33c   :  { %v407_v44 = vpop.f32.mrf.mxu3 }
 0x33d   :  { %413 = vst [vmem:[#allocation8 + $0x1] sm:$0x1] %v407_v44 }
 0x33e   :  { %426 = dma.vmem_to_hbm [thread:$0]  %s419_s23, 32, %s421_s26, [#allocation4], %s712_s29, %s712_s29, %s713_s30  }
 0x33f   :  { %707 = dma.done.wait [#allocation4], 32  }
 0x340   :  { %708 = vsyncadd [#allocation4], 4294967264 }
 0x341   :  { %709 = dma.done.wait [#allocation10], 32  }
 0x342   :  { %710 = vsyncadd [#allocation10], 4294967264 }
 0x343   :  { %448 = vsyncpa [#allocation3], 1 }
 0x344   :  { %449 = vsyncpa [#allocation6], 1 }
 0x345   :  { %450 = vsyncpa [#allocation4], 1 }
 0x346   :  { %451 = vsyncpa [#allocation10], 1 }

</bundles_post_ra>
